<compile_context>
chip_gen: v5e
topology: v5e:2x2
jax: 0.10.0
libtpu: 0.0.40
codegen_flags: <defaults>
</compile_context>

<pallas_src>
import functools

import numpy as np
import jax
import jax.numpy as jnp
from jax.experimental import pallas as pl
from jax.experimental.pallas import tpu as pltpu


@functools.lru_cache(maxsize=None)
def _row_expansion_matrix(W: int) -> np.ndarray:
    """0/1 matrix E of shape (W, 4W).

    For one low-res row y (Co, W):  y @ E  ==  [repeat(y, 2), repeat(y, 2)],
    i.e. output rows 2i and 2i+1 concatenated -> one row of the free
    (H, 4W) view of the (2H, 2W) output plane.  Exactly one '1' per column,
    so the product is an exact copy regardless of MXU precision passes.
    """
    j = np.arange(4 * W)
    src = (j % (2 * W)) // 2
    return np.asarray(np.arange(W)[:, None] == src[None, :], dtype=np.float32)


def _pick_row_chunk(H, W, C, Cf, Co, itemsize, *, max_unroll=8,
                    block_budget_bytes=12 << 20):
    """Low-res rows handled per grid step.

    Constraints: rh | H; rh is a multiple of 8 (sublane tile) or rh == H;
    rh <= max_unroll (kernel unrolls a static per-row loop); double-buffered
    per-step blocks stay under block_budget_bytes (conservative for v7x's
    64 MiB VMEM; v5e/v6e have 128 MiB); H//rh >= 2 so the grid exposes
    >= 2*N parallel programs for v7x's two TensorCores.
    """
    def db_bytes(rh):
        per_step = C * rh * W + Cf * rh * 4 * W + (Co + Cf) * rh * 4 * W
        return 2 * per_step * itemsize  # double-buffered in + out blocks

    best = None
    for rh in range(8, max_unroll + 1, 8):
        if H % rh == 0 and H // rh >= 2 and db_bytes(rh) <= block_budget_bytes:
            best = rh
    if best is None:
        # TODO(synk): for H not divisible by 8 or very large planes, pad H or
        # add a third grid axis instead of whole-plane chunks.
        best = H
    return best


def _upsample_conv_cat_kernel(w_ref, b_ref, e_ref, x_ref, f_ref, o_ref, *,
                              c_out, rows):
    # w_ref: (Co, C)   b_ref: (Co, 1)   e_ref: (W, 4W)
    # x_ref: (C, rows, W)   f_ref: (Cf, rows, 4W)   o_ref: (Co+Cf, rows, 4W)
    W = x_ref.shape[-1]
    w = w_ref[...]                                   # resident across grid
    e = e_ref[...]                                   # resident across grid
    bias = jnp.broadcast_to(b_ref[...], (c_out, W))  # hoisted (no per-iter bcast)

    # Static unrolled loop over the rows of this chunk (rows <= 8).
    for i in range(rows):
        xi = x_ref[:, i, :]                                          # (C, W)
        # 1x1 conv at LOW resolution == channel matmul on the MXU.
        yi = jnp.dot(w, xi, preferred_element_type=jnp.float32) + bias   # (Co, W)
        # Nearest-2x expansion (both W- and H-repeat) via the tiny per-row
        # 0/1 matrix: result is already the final row-major (4W-wide) layout.
        ui = jnp.dot(yi, e, preferred_element_type=jnp.float32)          # (Co, 4W)
        o_ref[:c_out, i, :] = ui.astype(o_ref.dtype)

    # Fused torch.cat: copy the skip feature map into the remaining channels.
    o_ref[c_out:, :, :] = f_ref[...].astype(o_ref.dtype)


def upsample_forward(x, feature_map, weight, bias):
    """UpSample.forward: cat(conv1x1(nearest_up2x(x)), feature_map), NCHW.

    x:           (N, C, H, W)
    feature_map: (N, Cf, 2H, 2W)
    weight:      (C//2, C)   (1x1 conv kernel, squeezed)
    bias:        (C//2,)
    returns      (N, C//2 + Cf, 2H, 2W)
    """
    N, C, H, W = x.shape
    Co = weight.shape[0]
    Nf, Cf, Hf, Wf = feature_map.shape
    assert (Nf, Hf, Wf) == (N, 2 * H, 2 * W)
    Ctot = Co + Cf

    rh = _pick_row_chunk(H, W, C, Cf, Co, jnp.dtype(x.dtype).itemsize)
    nchunks = H // rh

    # Free row-major views: (2H, 2W) == (H, 4W); view row i holds output rows
    # 2i and 2i+1 back-to-back — the exact layout the kernel produces per row.
    f4 = feature_map.reshape(N, Cf, H, 4 * W)
    E = jnp.asarray(_row_expansion_matrix(W), dtype=jnp.float32)
    w2 = weight.reshape(Co, C)
    b2 = bias.reshape(Co, 1).astype(jnp.float32)

    kernel = functools.partial(_upsample_conv_cat_kernel, c_out=Co, rows=rh)

    out4 = pl.pallas_call(
        kernel,
        out_shape=jax.ShapeDtypeStruct((N, Ctot, H, 4 * W), x.dtype),
        grid_spec=pltpu.PrefetchScalarGridSpec(
            num_scalar_prefetch=0,
            grid=(N, nchunks),
            in_specs=[
                pl.BlockSpec((Co, C), lambda n, r: (0, 0)),          # weight (resident)
                pl.BlockSpec((Co, 1), lambda n, r: (0, 0)),          # bias   (resident)
                pl.BlockSpec((W, 4 * W), lambda n, r: (0, 0)),       # E      (resident, tiny)
                pl.BlockSpec((pl.Squeezed(), C, rh, W),
                             lambda n, r: (n, 0, r, 0)),             # x row-chunk
                pl.BlockSpec((pl.Squeezed(), Cf, rh, 4 * W),
                             lambda n, r: (n, 0, r, 0)),             # skip row-chunk
            ],
            out_specs=pl.BlockSpec((pl.Squeezed(), Ctot, rh, 4 * W),
                                   lambda n, r: (n, 0, r, 0)),
        ),
        compiler_params=pltpu.CompilerParams(
            dimension_semantics=("parallel", "parallel"),
            vmem_limit_bytes=32 * 1024 * 1024,
        ),
    )(w2, b2, E, x, f4)

    return out4.reshape(N, Ctot, 2 * H, 2 * W)


if __name__ == "__main__":
    key = jax.random.PRNGKey(0)
    k1, k2, k3, k4 = jax.random.split(key, 4)

    N, C, H, W = 2, 4, 16, 16
    Co = C // 2
    x = jax.random.normal(k1, (N, C, H, W), dtype=jnp.float32)
    feature_map = jax.random.normal(k2, (N, Co, 2 * H, 2 * W), dtype=jnp.float32)
    # nn.Conv2d(C, C//2, 1, 1) parameters (1x1 kernel -> (Co, C) matrix + bias).
    weight = jax.random.normal(k3, (Co, C), dtype=jnp.float32) * 0.5
    bias = jax.random.normal(k4, (Co,), dtype=jnp.float32) * 0.1

    out = jax.jit(upsample_forward)(x, feature_map, weight, bias)
    out = jax.block_until_ready(out)

    # Reference faithful to the PyTorch forward: upsample -> 1x1 conv -> cat.
    up_ref = jnp.repeat(jnp.repeat(x, 2, axis=2), 2, axis=3)
    conv_ref = jnp.einsum("oc,nchw->nohw", weight, up_ref,
                          precision=jax.lax.Precision.HIGHEST)
    conv_ref = conv_ref + bias[None, :, None, None]
    ref = jnp.concatenate([conv_ref.astype(x.dtype), feature_map], axis=1)

    assert out.shape == (N, 2 * Co, 2 * H, 2 * W)
    err = float(jnp.max(jnp.abs(out - ref)))
    assert jnp.allclose(out, ref, atol=1e-4, rtol=1e-4), f"max abs err {err}"

    print("KERNEL_OK")
</pallas_src>

<mosaic_0001>
module attributes {stable_mosaic.version = 11 : i64} {
  func.func @_upsample_conv_cat_kernel(%arg0: i32, %arg1: i32, %arg2: memref<2x4xf32, #tpu.memory_space<vmem>>, %arg3: memref<2x1xf32, #tpu.memory_space<vmem>>, %arg4: memref<16x64xf32, #tpu.memory_space<vmem>>, %arg5: memref<1x4x8x16xf32, #tpu.memory_space<vmem>>, %arg6: memref<1x2x8x64xf32, #tpu.memory_space<vmem>>, %arg7: memref<1x4x8x64xf32, #tpu.memory_space<vmem>>) attributes {dimension_semantics = [#tpu.dimension_semantics<parallel>, #tpu.dimension_semantics<parallel>], iteration_bounds = array<i64: 2, 2>, scalar_prefetch = 0 : i64, scratch_operands = 0 : i64, tpu.core_type = #tpu.core_type<tc>, window_params = [{pipeline_mode = #tpu.pipeline_mode<synchronous>, transform_indices = @transform_0, window_bounds = array<i64: 2, 4>}, {pipeline_mode = #tpu.pipeline_mode<synchronous>, transform_indices = @transform_1, window_bounds = array<i64: 2, 1>}, {pipeline_mode = #tpu.pipeline_mode<synchronous>, transform_indices = @transform_2, window_bounds = array<i64: 16, 64>}, {transform_indices = @transform_3, window_bounds = array<i64: 1, 4, 8, 16>}, {transform_indices = @transform_4, window_bounds = array<i64: 1, 2, 8, 64>}, {transform_indices = @transform_5, window_bounds = array<i64: 1, 4, 8, 64>}]} {
    %c0 = arith.constant 0 : index
    %c0_0 = arith.constant 0 : index
    %0 = vector.load %arg2[%c0, %c0_0] : memref<2x4xf32, #tpu.memory_space<vmem>>, vector<2x4xf32>
    %c0_1 = arith.constant 0 : index
    %c0_2 = arith.constant 0 : index
    %1 = vector.load %arg4[%c0_1, %c0_2] : memref<16x64xf32, #tpu.memory_space<vmem>>, vector<16x64xf32>
    %c0_3 = arith.constant 0 : index
    %c0_4 = arith.constant 0 : index
    %2 = vector.load %arg3[%c0_3, %c0_4] : memref<2x1xf32, #tpu.memory_space<vmem>>, vector<2x1xf32>
    %3 = vector.shape_cast %2 : vector<2x1xf32> to vector<2x1xf32>
    %4 = vector.broadcast %3 : vector<2x1xf32> to vector<2x16xf32>
    %c0_5 = arith.constant 0 : index
    %c0_6 = arith.constant 0 : index
    %c0_7 = arith.constant 0 : index
    %c0_8 = arith.constant 0 : index
    %5 = vector.load %arg5[%c0_5, %c0_6, %c0_7, %c0_8] : memref<1x4x8x16xf32, #tpu.memory_space<vmem>>, vector<1x4x1x16xf32>
    %6 = vector.shape_cast %5 : vector<1x4x1x16xf32> to vector<4x16xf32>
    %cst = arith.constant dense<0.000000e+00> : vector<2x16xf32>
    %7 = tpu.matmul %0, %6, %cst {dimension_numbers = #tpu.dot_dimension_numbers<[1], [0], [0], [1], [0, 0, 1, 1], [], []>} : vector<2x4xf32>, vector<4x16xf32>, vector<2x16xf32> -> vector<2x16xf32>
    %8 = arith.addf %7, %4 : vector<2x16xf32>
    %cst_9 = arith.constant dense<0.000000e+00> : vector<2x64xf32>
    %9 = tpu.matmul %8, %1, %cst_9 {dimension_numbers = #tpu.dot_dimension_numbers<[1], [0], [0], [1], [0, 0, 1, 1], [], []>} : vector<2x16xf32>, vector<16x64xf32>, vector<2x64xf32> -> vector<2x64xf32>
    %c0_10 = arith.constant 0 : index
    %c0_11 = arith.constant 0 : index
    %c0_12 = arith.constant 0 : index
    %c0_13 = arith.constant 0 : index
    %10 = vector.load %arg7[%c0_10, %c0_11, %c0_12, %c0_13] : memref<1x4x8x64xf32, #tpu.memory_space<vmem>>, vector<1x2x1x64xf32>
    %11 = vector.shape_cast %10 : vector<1x2x1x64xf32> to vector<2x64xf32>
    %12 = vector.shape_cast %9 : vector<2x64xf32> to vector<1x2x1x64xf32>
    tpu.vector_store %arg7[%c0_10, %c0_11, %c0_12, %c0_13], %12 {strides = array<i32>} : memref<1x4x8x64xf32, #tpu.memory_space<vmem>>, vector<1x2x1x64xf32>,
    %c0_14 = arith.constant 0 : index
    %c0_15 = arith.constant 0 : index
    %c1 = arith.constant 1 : index
    %c0_16 = arith.constant 0 : index
    %13 = vector.load %arg5[%c0_14, %c0_15, %c1, %c0_16] : memref<1x4x8x16xf32, #tpu.memory_space<vmem>>, vector<1x4x1x16xf32>
    %14 = vector.shape_cast %13 : vector<1x4x1x16xf32> to vector<4x16xf32>
    %cst_17 = arith.constant dense<0.000000e+00> : vector<2x16xf32>
    %15 = tpu.matmul %0, %14, %cst_17 {dimension_numbers = #tpu.dot_dimension_numbers<[1], [0], [0], [1], [0, 0, 1, 1], [], []>} : vector<2x4xf32>, vector<4x16xf32>, vector<2x16xf32> -> vector<2x16xf32>
    %16 = arith.addf %15, %4 : vector<2x16xf32>
    %cst_18 = arith.constant dense<0.000000e+00> : vector<2x64xf32>
    %17 = tpu.matmul %16, %1, %cst_18 {dimension_numbers = #tpu.dot_dimension_numbers<[1], [0], [0], [1], [0, 0, 1, 1], [], []>} : vector<2x16xf32>, vector<16x64xf32>, vector<2x64xf32> -> vector<2x64xf32>
    %c0_19 = arith.constant 0 : index
    %c0_20 = arith.constant 0 : index
    %c1_21 = arith.constant 1 : index
    %c0_22 = arith.constant 0 : index
    %18 = vector.load %arg7[%c0_19, %c0_20, %c1_21, %c0_22] : memref<1x4x8x64xf32, #tpu.memory_space<vmem>>, vector<1x2x1x64xf32>
    %19 = vector.shape_cast %18 : vector<1x2x1x64xf32> to vector<2x64xf32>
    %20 = vector.shape_cast %17 : vector<2x64xf32> to vector<1x2x1x64xf32>
    tpu.vector_store %arg7[%c0_19, %c0_20, %c1_21, %c0_22], %20 {strides = array<i32>} : memref<1x4x8x64xf32, #tpu.memory_space<vmem>>, vector<1x2x1x64xf32>,
    %c0_23 = arith.constant 0 : index
    %c0_24 = arith.constant 0 : index
    %c2 = arith.constant 2 : index
    %c0_25 = arith.constant 0 : index
    %21 = vector.load %arg5[%c0_23, %c0_24, %c2, %c0_25] : memref<1x4x8x16xf32, #tpu.memory_space<vmem>>, vector<1x4x1x16xf32>
    %22 = vector.shape_cast %21 : vector<1x4x1x16xf32> to vector<4x16xf32>
    %cst_26 = arith.constant dense<0.000000e+00> : vector<2x16xf32>
    %23 = tpu.matmul %0, %22, %cst_26 {dimension_numbers = #tpu.dot_dimension_numbers<[1], [0], [0], [1], [0, 0, 1, 1], [], []>} : vector<2x4xf32>, vector<4x16xf32>, vector<2x16xf32> -> vector<2x16xf32>
    %24 = arith.addf %23, %4 : vector<2x16xf32>
    %cst_27 = arith.constant dense<0.000000e+00> : vector<2x64xf32>
    %25 = tpu.matmul %24, %1, %cst_27 {dimension_numbers = #tpu.dot_dimension_numbers<[1], [0], [0], [1], [0, 0, 1, 1], [], []>} : vector<2x16xf32>, vector<16x64xf32>, vector<2x64xf32> -> vector<2x64xf32>
    %c0_28 = arith.constant 0 : index
    %c0_29 = arith.constant 0 : index
    %c2_30 = arith.constant 2 : index
    %c0_31 = arith.constant 0 : index
    %26 = vector.load %arg7[%c0_28, %c0_29, %c2_30, %c0_31] : memref<1x4x8x64xf32, #tpu.memory_space<vmem>>, vector<1x2x1x64xf32>
    %27 = vector.shape_cast %26 : vector<1x2x1x64xf32> to vector<2x64xf32>
    %28 = vector.shape_cast %25 : vector<2x64xf32> to vector<1x2x1x64xf32>
    tpu.vector_store %arg7[%c0_28, %c0_29, %c2_30, %c0_31], %28 {strides = array<i32>} : memref<1x4x8x64xf32, #tpu.memory_space<vmem>>, vector<1x2x1x64xf32>,
    %c0_32 = arith.constant 0 : index
    %c0_33 = arith.constant 0 : index
    %c3 = arith.constant 3 : index
    %c0_34 = arith.constant 0 : index
    %29 = vector.load %arg5[%c0_32, %c0_33, %c3, %c0_34] : memref<1x4x8x16xf32, #tpu.memory_space<vmem>>, vector<1x4x1x16xf32>
    %30 = vector.shape_cast %29 : vector<1x4x1x16xf32> to vector<4x16xf32>
    %cst_35 = arith.constant dense<0.000000e+00> : vector<2x16xf32>
    %31 = tpu.matmul %0, %30, %cst_35 {dimension_numbers = #tpu.dot_dimension_numbers<[1], [0], [0], [1], [0, 0, 1, 1], [], []>} : vector<2x4xf32>, vector<4x16xf32>, vector<2x16xf32> -> vector<2x16xf32>
    %32 = arith.addf %31, %4 : vector<2x16xf32>
    %cst_36 = arith.constant dense<0.000000e+00> : vector<2x64xf32>
    %33 = tpu.matmul %32, %1, %cst_36 {dimension_numbers = #tpu.dot_dimension_numbers<[1], [0], [0], [1], [0, 0, 1, 1], [], []>} : vector<2x16xf32>, vector<16x64xf32>, vector<2x64xf32> -> vector<2x64xf32>
    %c0_37 = arith.constant 0 : index
    %c0_38 = arith.constant 0 : index
    %c3_39 = arith.constant 3 : index
    %c0_40 = arith.constant 0 : index
    %34 = vector.load %arg7[%c0_37, %c0_38, %c3_39, %c0_40] : memref<1x4x8x64xf32, #tpu.memory_space<vmem>>, vector<1x2x1x64xf32>
    %35 = vector.shape_cast %34 : vector<1x2x1x64xf32> to vector<2x64xf32>
    %36 = vector.shape_cast %33 : vector<2x64xf32> to vector<1x2x1x64xf32>
    tpu.vector_store %arg7[%c0_37, %c0_38, %c3_39, %c0_40], %36 {strides = array<i32>} : memref<1x4x8x64xf32, #tpu.memory_space<vmem>>, vector<1x2x1x64xf32>,
    %c0_41 = arith.constant 0 : index
    %c0_42 = arith.constant 0 : index
    %c4 = arith.constant 4 : index
    %c0_43 = arith.constant 0 : index
    %37 = vector.load %arg5[%c0_41, %c0_42, %c4, %c0_43] : memref<1x4x8x16xf32, #tpu.memory_space<vmem>>, vector<1x4x1x16xf32>
    %38 = vector.shape_cast %37 : vector<1x4x1x16xf32> to vector<4x16xf32>
    %cst_44 = arith.constant dense<0.000000e+00> : vector<2x16xf32>
    %39 = tpu.matmul %0, %38, %cst_44 {dimension_numbers = #tpu.dot_dimension_numbers<[1], [0], [0], [1], [0, 0, 1, 1], [], []>} : vector<2x4xf32>, vector<4x16xf32>, vector<2x16xf32> -> vector<2x16xf32>
    %40 = arith.addf %39, %4 : vector<2x16xf32>
    %cst_45 = arith.constant dense<0.000000e+00> : vector<2x64xf32>
    %41 = tpu.matmul %40, %1, %cst_45 {dimension_numbers = #tpu.dot_dimension_numbers<[1], [0], [0], [1], [0, 0, 1, 1], [], []>} : vector<2x16xf32>, vector<16x64xf32>, vector<2x64xf32> -> vector<2x64xf32>
    %c0_46 = arith.constant 0 : index
    %c0_47 = arith.constant 0 : index
    %c4_48 = arith.constant 4 : index
    %c0_49 = arith.constant 0 : index
    %42 = vector.load %arg7[%c0_46, %c0_47, %c4_48, %c0_49] : memref<1x4x8x64xf32, #tpu.memory_space<vmem>>, vector<1x2x1x64xf32>
    %43 = vector.shape_cast %42 : vector<1x2x1x64xf32> to vector<2x64xf32>
    %44 = vector.shape_cast %41 : vector<2x64xf32> to vector<1x2x1x64xf32>
    tpu.vector_store %arg7[%c0_46, %c0_47, %c4_48, %c0_49], %44 {strides = array<i32>} : memref<1x4x8x64xf32, #tpu.memory_space<vmem>>, vector<1x2x1x64xf32>,
    %c0_50 = arith.constant 0 : index
    %c0_51 = arith.constant 0 : index
    %c5 = arith.constant 5 : index
    %c0_52 = arith.constant 0 : index
    %45 = vector.load %arg5[%c0_50, %c0_51, %c5, %c0_52] : memref<1x4x8x16xf32, #tpu.memory_space<vmem>>, vector<1x4x1x16xf32>
    %46 = vector.shape_cast %45 : vector<1x4x1x16xf32> to vector<4x16xf32>
    %cst_53 = arith.constant dense<0.000000e+00> : vector<2x16xf32>
    %47 = tpu.matmul %0, %46, %cst_53 {dimension_numbers = #tpu.dot_dimension_numbers<[1], [0], [0], [1], [0, 0, 1, 1], [], []>} : vector<2x4xf32>, vector<4x16xf32>, vector<2x16xf32> -> vector<2x16xf32>
    %48 = arith.addf %47, %4 : vector<2x16xf32>
    %cst_54 = arith.constant dense<0.000000e+00> : vector<2x64xf32>
    %49 = tpu.matmul %48, %1, %cst_54 {dimension_numbers = #tpu.dot_dimension_numbers<[1], [0], [0], [1], [0, 0, 1, 1], [], []>} : vector<2x16xf32>, vector<16x64xf32>, vector<2x64xf32> -> vector<2x64xf32>
    %c0_55 = arith.constant 0 : index
    %c0_56 = arith.constant 0 : index
    %c5_57 = arith.constant 5 : index
    %c0_58 = arith.constant 0 : index
    %50 = vector.load %arg7[%c0_55, %c0_56, %c5_57, %c0_58] : memref<1x4x8x64xf32, #tpu.memory_space<vmem>>, vector<1x2x1x64xf32>
    %51 = vector.shape_cast %50 : vector<1x2x1x64xf32> to vector<2x64xf32>
    %52 = vector.shape_cast %49 : vector<2x64xf32> to vector<1x2x1x64xf32>
    tpu.vector_store %arg7[%c0_55, %c0_56, %c5_57, %c0_58], %52 {strides = array<i32>} : memref<1x4x8x64xf32, #tpu.memory_space<vmem>>, vector<1x2x1x64xf32>,
    %c0_59 = arith.constant 0 : index
    %c0_60 = arith.constant 0 : index
    %c6 = arith.constant 6 : index
    %c0_61 = arith.constant 0 : index
    %53 = vector.load %arg5[%c0_59, %c0_60, %c6, %c0_61] : memref<1x4x8x16xf32, #tpu.memory_space<vmem>>, vector<1x4x1x16xf32>
    %54 = vector.shape_cast %53 : vector<1x4x1x16xf32> to vector<4x16xf32>
    %cst_62 = arith.constant dense<0.000000e+00> : vector<2x16xf32>
    %55 = tpu.matmul %0, %54, %cst_62 {dimension_numbers = #tpu.dot_dimension_numbers<[1], [0], [0], [1], [0, 0, 1, 1], [], []>} : vector<2x4xf32>, vector<4x16xf32>, vector<2x16xf32> -> vector<2x16xf32>
    %56 = arith.addf %55, %4 : vector<2x16xf32>
    %cst_63 = arith.constant dense<0.000000e+00> : vector<2x64xf32>
    %57 = tpu.matmul %56, %1, %cst_63 {dimension_numbers = #tpu.dot_dimension_numbers<[1], [0], [0], [1], [0, 0, 1, 1], [], []>} : vector<2x16xf32>, vector<16x64xf32>, vector<2x64xf32> -> vector<2x64xf32>
    %c0_64 = arith.constant 0 : index
    %c0_65 = arith.constant 0 : index
    %c6_66 = arith.constant 6 : index
    %c0_67 = arith.constant 0 : index
    %58 = vector.load %arg7[%c0_64, %c0_65, %c6_66, %c0_67] : memref<1x4x8x64xf32, #tpu.memory_space<vmem>>, vector<1x2x1x64xf32>
    %59 = vector.shape_cast %58 : vector<1x2x1x64xf32> to vector<2x64xf32>
    %60 = vector.shape_cast %57 : vector<2x64xf32> to vector<1x2x1x64xf32>
    tpu.vector_store %arg7[%c0_64, %c0_65, %c6_66, %c0_67], %60 {strides = array<i32>} : memref<1x4x8x64xf32, #tpu.memory_space<vmem>>, vector<1x2x1x64xf32>,
    %c0_68 = arith.constant 0 : index
    %c0_69 = arith.constant 0 : index
    %c7 = arith.constant 7 : index
    %c0_70 = arith.constant 0 : index
    %61 = vector.load %arg5[%c0_68, %c0_69, %c7, %c0_70] : memref<1x4x8x16xf32, #tpu.memory_space<vmem>>, vector<1x4x1x16xf32>
    %62 = vector.shape_cast %61 : vector<1x4x1x16xf32> to vector<4x16xf32>
    %cst_71 = arith.constant dense<0.000000e+00> : vector<2x16xf32>
    %63 = tpu.matmul %0, %62, %cst_71 {dimension_numbers = #tpu.dot_dimension_numbers<[1], [0], [0], [1], [0, 0, 1, 1], [], []>} : vector<2x4xf32>, vector<4x16xf32>, vector<2x16xf32> -> vector<2x16xf32>
    %64 = arith.addf %63, %4 : vector<2x16xf32>
    %cst_72 = arith.constant dense<0.000000e+00> : vector<2x64xf32>
    %65 = tpu.matmul %64, %1, %cst_72 {dimension_numbers = #tpu.dot_dimension_numbers<[1], [0], [0], [1], [0, 0, 1, 1], [], []>} : vector<2x16xf32>, vector<16x64xf32>, vector<2x64xf32> -> vector<2x64xf32>
    %c0_73 = arith.constant 0 : index
    %c0_74 = arith.constant 0 : index
    %c7_75 = arith.constant 7 : index
    %c0_76 = arith.constant 0 : index
    %66 = vector.load %arg7[%c0_73, %c0_74, %c7_75, %c0_76] : memref<1x4x8x64xf32, #tpu.memory_space<vmem>>, vector<1x2x1x64xf32>
    %67 = vector.shape_cast %66 : vector<1x2x1x64xf32> to vector<2x64xf32>
    %68 = vector.shape_cast %65 : vector<2x64xf32> to vector<1x2x1x64xf32>
    tpu.vector_store %arg7[%c0_73, %c0_74, %c7_75, %c0_76], %68 {strides = array<i32>} : memref<1x4x8x64xf32, #tpu.memory_space<vmem>>, vector<1x2x1x64xf32>,
    %c0_77 = arith.constant 0 : index
    %c0_78 = arith.constant 0 : index
    %c0_79 = arith.constant 0 : index
    %c0_80 = arith.constant 0 : index
    %69 = vector.load %arg6[%c0_77, %c0_78, %c0_79, %c0_80] : memref<1x2x8x64xf32, #tpu.memory_space<vmem>>, vector<1x2x8x64xf32>
    %70 = vector.shape_cast %69 : vector<1x2x8x64xf32> to vector<2x8x64xf32>
    %c0_81 = arith.constant 0 : index
    %c2_82 = arith.constant 2 : index
    %c0_83 = arith.constant 0 : index
    %c0_84 = arith.constant 0 : index
    %71 = vector.load %arg7[%c0_81, %c2_82, %c0_83, %c0_84] : memref<1x4x8x64xf32, #tpu.memory_space<vmem>>, vector<1x2x8x64xf32>
    %72 = vector.shape_cast %71 : vector<1x2x8x64xf32> to vector<2x8x64xf32>
    %73 = vector.shape_cast %70 : vector<2x8x64xf32> to vector<1x2x8x64xf32>
    tpu.vector_store %arg7[%c0_81, %c2_82, %c0_83, %c0_84], %73 {strides = array<i32>} : memref<1x4x8x64xf32, #tpu.memory_space<vmem>>, vector<1x2x8x64xf32>,
    return
  }
  func.func @transform_0(%arg0: i32, %arg1: i32) -> (i32, i32) {
    %c0_i32 = arith.constant 0 : i32
    %c0_i32_0 = arith.constant 0 : i32
    %c0_i32_1 = arith.constant 0 : i32
    return %c0_i32, %c0_i32_0 : i32, i32
  }
  func.func @transform_1(%arg0: i32, %arg1: i32) -> (i32, i32) {
    %c0_i32 = arith.constant 0 : i32
    %c0_i32_0 = arith.constant 0 : i32
    %c0_i32_1 = arith.constant 0 : i32
    return %c0_i32, %c0_i32_0 : i32, i32
  }
  func.func @transform_2(%arg0: i32, %arg1: i32) -> (i32, i32) {
    %c0_i32 = arith.constant 0 : i32
    %c0_i32_0 = arith.constant 0 : i32
    %c0_i32_1 = arith.constant 0 : i32
    return %c0_i32, %c0_i32_0 : i32, i32
  }
  func.func @transform_3(%arg0: i32, %arg1: i32) -> (i32, i32, i32, i32) {
    %c0_i32 = arith.constant 0 : i32
    %c0_i32_0 = arith.constant 0 : i32
    %c0_i32_1 = arith.constant 0 : i32
    return %arg0, %c0_i32, %arg1, %c0_i32_0 : i32, i32, i32, i32
  }
  func.func @transform_4(%arg0: i32, %arg1: i32) -> (i32, i32, i32, i32) {
    %c0_i32 = arith.constant 0 : i32
    %c0_i32_0 = arith.constant 0 : i32
    %c0_i32_1 = arith.constant 0 : i32
    return %arg0, %c0_i32, %arg1, %c0_i32_0 : i32, i32, i32, i32
  }
  func.func @transform_5(%arg0: i32, %arg1: i32) -> (i32, i32, i32, i32) {
    %c0_i32 = arith.constant 0 : i32
    %c0_i32_0 = arith.constant 0 : i32
    %c0_i32_1 = arith.constant 0 : i32
    return %arg0, %c0_i32, %arg1, %c0_i32_0 : i32, i32, i32, i32
  }
}

</mosaic_0001>

<bundles_post_ra>
// kernel: upsample_forward.1
= control target key start
LH: loop header
LB: loop body
LE: loop exit
PB: predicated region body
PF: predicated region fallthrough
CT: control target
= control target key end

     0   :  { %s1222_s18 = smov 0   ;;  %s1224_s19 = smov 0   ;;  %s1514_s0 = inlined_call_operand.vmem [shape: f32[2,4], index: 0, kind: input, shape index: {}]   ;;  %s1515_s1 = inlined_call_operand.vmem [shape: f32[2,1], index: 1, kind: input, shape index: {}]   ;;  %s1516_s2 = inlined_call_operand.vmem [shape: f32[16,64], index: 2, kind: input, shape index: {}]   ;;  %s1517_s3 = inlined_call_operand.vmem [shape: f32[2,4,16,16], index: 3, kind: input, shape index: {}]   ;;  %s1518_s4 = inlined_call_operand.vmem [shape: f32[2,2,16,64], index: 4, kind: input, shape index: {}]   ;;  %s1519_s5 = inlined_call_operand.vmem [shape: f32[2,4,16,64], index: 5, kind: output, shape index: {}]  }
   0x1   :  { %s1226_s20 = smov 0   ;;  %s1228_s21 = smov 0  }
   0x2   :  { %s1230_s22 = smov 0   ;;  %s1232_s23 = smov 0  }
   0x3   :  { %s1234_s24 = smov 0  }
   0x4 LB: > { %s24_s25 = sadd.s32 1, %s1181_s22  ;;  %s27_s26 = sadd.s32 1, %s1185_s23  ;;  %s1189_s24 = sphi %s1234_s24, %s15_s24   ;;  %s1185_s23 = sphi %s1232_s23, %s1527_s23   ;;  %s1181_s22 = sphi %s1230_s22, %s1526_s22   ;;  %s1177_s21 = sphi %s1228_s21, %s1525_s21   ;;  %s1173_s20 = sphi %s1226_s20, %s1524_s20   ;;  %s1169_s19 = sphi %s1224_s19, %s1523_s19   ;;  %s1165_s18 = sphi %s1222_s18, %s1522_s18  }
   0x5   : > { %p25_p0 = scmp.ge.s32.totalorder %s24_s25, 2  ;;  %s1032_s27 = sadd.s32 4294967295, %s1189_s24  }
   0x6   : > { %p106_p1 = scmp.ne.s32.totalorder %s1169_s19, %s1165_s18  ;;  %p107_p2 = scmp.eq.s32.totalorder %s1189_s24, 0 }
   0x7   : > { %s1529_s25 = smov (%p25_p0, %s24_s25), 0  ;;  %s1531_s26 = smov (!%p25_p0, %s27_s26), %s1185_s23 }
   0x8   : > { %p29_p3 = scmp.ge.s32.totalorder %s1531_s26, 2  ;;  %p166_p4 = scmp.eq.s32.totalorder %s1032_s27, 3 }
   0x9   : > { %s95_s28 = ssub.s32 %s1181_s22, %s1529_s25  ;;  %p1268_p5 = por %p107_p2, %p106_p1 }
   0xa   : > { %s1533_s26 = smov (%p29_p3, %s1531_s26), 0  ;;  %p1274_p6 = por %p166_p4, %p106_p1 }
   0xb   : > { %s94_s6 = ssub.s32 %s1185_s23, %s1533_s26  ;;  %s99_s8 = sadd.s32 1, %s1169_s19 }
   0xc   : > { %s96_s7 = sor.u32 %s95_s28, %s94_s6  ;;  %p1035_p8 = scmp.ge.s32.totalorder %s1189_s24, 4 }
   0xd   : > { %p97_p7 = scmp.eq.s32.totalorder %s96_s7, 0 }
   0xe   : > { %197 = sbr.rel (%p1035_p8) target bundleno = 37 (0x25), region = 28 }
   0xf   : > { %s1282_s9 = scalar_select %p97_p7, %s1169_s19, %s99_s8  }
  0x13   : > { %200 = sbr.rel (!%p1268_p5) target bundleno = 29 (0x1d), region = 32  ;;  %s202_s10 = sand.u32 (%p1268_p5), 1, %s1169_s19  }
  0x14   : > { %s1037_s11 = sshll.u32 (%p1268_p5), %s1185_s23, 3  ;;  %s1036_s12 = sshll.u32 (%p1268_p5), %s202_s10, 5 }
  0x15   : > { %s206_s13 = sadd.s32 (%p1268_p5), %s1181_s22, %s1037_s11  ;;  %s204_s27 = scalar_lea.vmem (%p1268_p5), [#allocation2], %s1036_s12 }
  0x16   : > { %s1038_s14 = sshll.u32 (%p1268_p5), %s206_s13, 3 }
  0x17   : > { %s208_s17 = scalar_lea.vmem (%p1268_p5), %s1517_s3, %s1038_s14 }
  0x18   : > { %v243_v0 = vld [vmem:[%s208_s17] sm:$0xff]  ;;  %v245_v1 = vld [vmem:[%s208_s17 + $0x10] sm:$0xff] }
  0x19   : > { %v247_v2 = vld [vmem:[%s208_s17 + $0x20] sm:$0xff]  ;;  %244 = vst [vmem:[%s204_s27] sm:$0xff] %v243_v0  ;;  %v249_v3 = vld [vmem:[%s208_s17 + $0x30] sm:$0xff] }
  0x1a   : > { %246 = vst [vmem:[%s204_s27 + $0x8] sm:$0xff] %v245_v1 }
  0x1b   : > { %248 = vst [vmem:[%s204_s27 + $0x10] sm:$0xff] %v247_v2 }
  0x1c   : > { %250 = vst [vmem:[%s204_s27 + $0x18] sm:$0xff] %v249_v3 }
  0x1d PF: > { %256 = sbr.rel (!%p1268_p5) target bundleno = 37 (0x25), region = 70  ;;  %s258_s28 = sand.u32 (%p1268_p5), 1, %s1169_s19  }
  0x1e   : > { %s1040_s6 = sshll.u32 (%p1268_p5), %s1185_s23, 2  ;;  %s1039_s7 = sshll.u32 (%p1268_p5), %s258_s28, 4 }
  0x1f   : > { %s262_s8 = sadd.s32 (%p1268_p5), %s1181_s22, %s1040_s6  ;;  %s260_s14 = scalar_lea.vmem (%p1268_p5), [#allocation3], %s1039_s7 }
  0x20   : > { %s1041_s10 = sshll.u32 (%p1268_p5), %s262_s8, 3 }
  0x21   : > { %s264_s12 = scalar_lea.vmem (%p1268_p5), %s1518_s4, %s1041_s10 }
  0x22   : > { %v295_v4 = vld [vmem:[%s264_s12] sm:$0xff]  ;;  %v297_v5 = vld [vmem:[%s264_s12 + $0x10] sm:$0xff] }
  0x23   : > { %296 = vst [vmem:[%s260_s14] sm:$0xff] %v295_v4 }
  0x24   : > { %298 = vst [vmem:[%s260_s14 + $0x8] sm:$0xff] %v297_v5 }
  0x25 PF: > { %p1042_p9 = scmp.ge.s32.totalorder %s1189_s24, 1  ;;  %p303_p10 = scmp.lt.s32.totalorder %s1189_s24, 5 }
  0x27   : > { %p304_p11 = pnand %p1042_p9, %p303_p10 }
  0x28   : > { %s310_s29 = sand.u32 (!%p304_p11), 1, %s1165_s18  }
  0x29   : > { %307 = sbr.rel (%p304_p11) target bundleno = 478 (0x1de), region = 108  ;;  %s1306_s15 = sshll.u32 (!%p304_p11), %s310_s29, 5 }
  0x2a   : > { %s1312_s27 = scalar_lea.vmem (!%p304_p11), [#allocation2], %s1306_s15  ;;  %s1044_s13 = sshll.u32 (!%p304_p11), %s310_s29, 4 }
  0x2b   : > { %s319_s12 = scalar_lea.vmem (!%p304_p11), [#allocation3], %s1044_s13  ;;  %s1438_s14 = scalar_lea.vmem (!%p304_p11), [#allocation4], %s1306_s15 }
  0x2e   : > { %vm365_vm0 = vcmask 1041409   ;;  %vm368_vm1 = vcmask 1042434   ;;  %vm371_vm2 = vcmask 1043459   ;;  %v1191_v6 = vmov 0   ;;  %v350_v7 = vld [vmem:[%s1515_s1] sm:$0x3] }
  0x2f   : > { %1134 = vset.pattern.permute.xlu0 %v1191_v6  ;;  %v356_v8 = vld [vmem:[%s1312_s27] sm:$0x1]  ;;  %v357_v9 = vld [vmem:[%s1312_s27 + $0x8] sm:$0x1]  ;;  %v358_v10 = vld [vmem:[%s1312_s27 + $0x10] sm:$0x1] }
  0x30   : > { %353 = vperm.xlu0 %1134, %v350_v7   ;;  %v359_v11 = vld [vmem:[%s1312_s27 + $0x18] sm:$0x1]  ;;  %v364_v12 = vrot.slane %v357_v9, 7  ;;  %v367_v13 = vrot.slane %v358_v10, 6  ;;  %v430_v14 = vld [vmem:[%s1312_s27 + $0x1] sm:$0x1] }
  0x31   : > { %v370_v15 = vrot.slane %v359_v11, 5  ;;  %vm377_vm3 = vcmask 1043456   ;;  %v431_v16 = vld [vmem:[%s1312_s27 + $0x9] sm:$0x1]  ;;  %v432_v17 = vld [vmem:[%s1312_s27 + $0x11] sm:$0x1] }
  0x32   : > { %v1324_v18 = vld [vmem:[%s1514_s0] sm:$0x3]  ;;  %v366_v19 = vsel %vm365_vm0, %v364_v12, %v356_v8  ;;  %v433_v20 = vld [vmem:[%s1312_s27 + $0x19] sm:$0x1]  ;;  %v438_v21 = vrot.slane %v431_v16, 7  ;;  %v440_v22 = vrot.slane %v432_v17, 6 }
  0x33   : > { %v494_v23 = vld [vmem:[%s1312_s27 + $0x2] sm:$0x1]  ;;  %v369_v24 = vsel %vm368_vm1, %v367_v13, %v366_v19  ;;  %v442_v25 = vrot.slane %v433_v20, 5  ;;  %vm373_vm4 = vcmask 31744   ;;  %v495_v26 = vld [vmem:[%s1312_s27 + $0xa] sm:$0x1] }
  0x34   : > { %v496_v27 = vld [vmem:[%s1312_s27 + $0x12] sm:$0x1]  ;;  %v372_v28 = vsel %vm371_vm2, %v370_v15, %v369_v24  ;;  %v439_v29 = vsel %vm365_vm0, %v438_v21, %v430_v14  ;;  %v497_v30 = vld [vmem:[%s1312_s27 + $0x1a] sm:$0x1]  ;;  %v502_v31 = vrot.slane %v495_v26, 7  ;;  %v1372_v59 = vld [vmem:[%s1516_s2 + $0x8] sm:$0xff] }
  0x35   : > { %v504_v32 = vrot.slane %v496_v27, 6  ;;  %v622_v33 = vld [vmem:[%s1312_s27 + $0x4] sm:$0x1]  ;;  %1046 = vmatpush.msk.msra.mxu0 %vm377_vm3, %v372_v28  ;;  %v441_v34 = vsel %vm368_vm1, %v440_v22, %v439_v29  ;;  %v506_v35 = vrot.slane %v497_v30, 5  ;;  %v623_v36 = vld [vmem:[%s1312_s27 + $0xc] sm:$0x1]  ;;  %418 = vmatpush.msra.mxu1 %v1372_v59 }
  0x36   : > { %v624_v37 = vld [vmem:[%s1312_s27 + $0x14] sm:$0x1]  ;;  %v443_v38 = vsel %vm371_vm2, %v442_v25, %v441_v34  ;;  %1047 = vmatmul.msk.f32.vlgmr.msra.gmra.mxu0 %vm373_vm4, %v1324_v18  ;;  %v503_v39 = vsel %vm365_vm0, %v502_v31, %v494_v23  ;;  %v625_v40 = vld [vmem:[%s1312_s27 + $0x1c] sm:$0x1]  ;;  %v630_v41 = vrot.slane %v623_v36, 7  ;;  %v1377_v60 = vld [vmem:[%s1516_s2] sm:$0xff]  ;;  %483 = vmatpush.msra.mxu3 %v1372_v59 }
  0x37   : > { %v632_v42 = vrot.slane %v624_v37, 6  ;;  %v750_v43 = vld [vmem:[%s1312_s27 + $0x6] sm:$0x1]  ;;  %1049 = vmatpush.msk.msra.mxu2 %vm377_vm3, %v443_v38  ;;  %v505_v44 = vsel %vm368_vm1, %v504_v32, %v503_v39  ;;  %v634_v45 = vrot.slane %v625_v40, 5  ;;  %v751_v46 = vld [vmem:[%s1312_s27 + $0xe] sm:$0x1]  ;;  %419 = vmatpush.msra.mxu1 %v1377_v60 }
  0x38   : > { %v752_v47 = vld [vmem:[%s1312_s27 + $0x16] sm:$0x1]  ;;  %1050 = vmatmul.msk.f32.vlgmr.msra.gmra.mxu2 %vm373_vm4, %v1324_v18  ;;  %v507_v48 = vsel %vm371_vm2, %v506_v35, %v505_v44  ;;  %v631_v49 = vsel %vm365_vm0, %v630_v41, %v622_v33  ;;  %v753_v50 = vld [vmem:[%s1312_s27 + $0x1e] sm:$0x1]  ;;  %v758_v51 = vrot.slane %v751_v46, 7  ;;  %484 = vmatpush.msra.mxu3 %v1377_v60  ;;  %vm400_vm5 = vcmask 130048  }
  0x39   : > { %v760_v52 = vrot.slane %v752_v47, 6  ;;  %1052 = vmatpush.msk.msrb.mxu0 %vm377_vm3, %v507_v48  ;;  %v633_v53 = vsel %vm368_vm1, %v632_v42, %v631_v49  ;;  %v762_v54 = vrot.slane %v753_v50, 5  ;;  %v558_v61 = vld [vmem:[%s1312_s27 + $0x3] sm:$0x1]  ;;  %v559_v62 = vld [vmem:[%s1312_s27 + $0xb] sm:$0x1]  ;;  %547 = vmatpush.msrb.mxu2 %v1372_v59 }
  0x3a   : > { %v635_v55 = vsel %vm371_vm2, %v634_v45, %v633_v53  ;;  %v759_v56 = vsel %vm365_vm0, %v758_v51, %v750_v43  ;;  %v560_v63 = vld [vmem:[%s1312_s27 + $0x13] sm:$0x1]  ;;  %v561_v0 = vld [vmem:[%s1312_s27 + $0x1b] sm:$0x1]  ;;  %v566_v1 = vrot.slane %v559_v62, 7  ;;  %611 = vmatpush.msrb.mxu3 %v1372_v59  ;;  %vm881_vm6 = vcmask 523264  }
  0x3b   : > { %1058 = vmatpush.msk.msra.mxu0 %vm377_vm3, %v635_v55  ;;  %v761_v57 = vsel %vm368_vm1, %v760_v52, %v759_v56  ;;  %v568_v2 = vrot.slane %v560_v63, 6  ;;  %v570_v3 = vrot.slane %v561_v0, 5  ;;  %548 = vmatpush.msrb.mxu2 %v1377_v60  ;;  %v687_v7 = vld [vmem:[%s1312_s27 + $0xd] sm:$0x1]  ;;  %v688_v8 = vld [vmem:[%s1312_s27 + $0x15] sm:$0x1] }
  0x3c   : > { %v763_v58 = vsel %vm371_vm2, %v762_v54, %v761_v57  ;;  %v567_v4 = vsel %vm365_vm0, %v566_v1, %v558_v61  ;;  %612 = vmatpush.msrb.mxu3 %v1377_v60  ;;  %v694_v9 = vrot.slane %v687_v7, 7  ;;  %v686_v10 = vld [vmem:[%s1312_s27 + $0x5] sm:$0x1]  ;;  %v689_v11 = vld [vmem:[%s1312_s27 + $0x1d] sm:$0x1]  ;;  %v696_v12 = vrot.slane %v688_v8, 6 }
  0x3d   : > { %675 = vmatpush.msra.mxu2 %v1372_v59  ;;  %v569_v5 = vsel %vm368_vm1, %v568_v2, %v567_v4  ;;  %v698_v14 = vrot.slane %v689_v11, 5  ;;  %v815_v15 = vld [vmem:[%s1312_s27 + $0xf] sm:$0x1]  ;;  %v816_v20 = vld [vmem:[%s1312_s27 + $0x17] sm:$0x1]  ;;  %vm427_vm7 = vcmask 516096  }
  0x3e   : > { %1053 = vmatmul.msk.f32.vlgmr.msrb.gmra.mxu0 %vm373_vm4, %v1324_v18  ;;  %v571_v6 = vsel %vm371_vm2, %v570_v3, %v569_v5  ;;  %v695_v13 = vsel %vm365_vm0, %v694_v9, %v686_v10  ;;  %v822_v21 = vrot.slane %v815_v15, 7  ;;  %v814_v24 = vld [vmem:[%s1312_s27 + $0x7] sm:$0x1]  ;;  %v817_v25 = vld [vmem:[%s1312_s27 + $0x1f] sm:$0x1]  ;;  %v824_v26 = vrot.slane %v816_v20, 6 }
  0x3f   : > { %1064 = vmatpush.msk.msrb.mxu0 %vm377_vm3, %v763_v58  ;;  %676 = vmatpush.msra.mxu2 %v1377_v60  ;;  %v697_v17 = vsel %vm368_vm1, %v696_v12, %v695_v13  ;;  %v826_v28 = vrot.slane %v817_v25, 5  ;;  %v878_v39 = vld [vmem:[%s319_s12] sm:$0xff]  ;;  %v879_v40 = vld [vmem:[%s319_s12 + $0x8] sm:$0xff]  ;;  %s1073_s18 = sshll.u32 (%p1274_p6), %s1177_s21, 3 }
  0x40   : > { %1055 = vmatpush.msk.msrb.mxu1 %vm377_vm3, %v571_v6  ;;  %v699_v23 = vsel %vm371_vm2, %v698_v14, %v697_v17  ;;  %v823_v27 = vsel %vm365_vm0, %v822_v21, %v814_v24  ;;  %1070 = vst.msk [vmem:[%s1438_s14 + $0x10] sm:$0xff] %vm881_vm6, %v878_v39  ;;  %s892_s29 = sadd.s32 (%p1274_p6), %s1173_s20, %s1073_s18 }
  0x41   : > { %v825_v29 = vsel %vm368_vm1, %v824_v26, %v823_v27  ;;  %1071 = vst.msk [vmem:[%s1438_s14 + $0x18] sm:$0xff] %vm881_vm6, %v879_v40  ;;  %s1074_s15 = sshll.u32 (%p1274_p6), %s892_s29, 3 }
  0x42   : > { %v827_v34 = vsel %vm371_vm2, %v826_v28, %v825_v29  ;;  %s894_s27 = scalar_lea.vmem (%p1274_p6), %s1519_s5, %s1074_s15 }
  0x46   : > { %1059 = vmatmul.msk.f32.vlgmr.msra.gmra.mxu0 %vm373_vm4, %v1324_v18 }
  0x47   : > { %v933_v0 = vld [vmem:[%s1438_s14 + $0x10] sm:$0xff] (%p1274_p6) }
  0x48   : > { %v935_v1 = vld [vmem:[%s1438_s14 + $0x18] sm:$0xff] (%p1274_p6)  ;;  %934 = vst [vmem:[%s894_s27 + $0x20] sm:$0xff] (%p1274_p6), %v933_v0 }
  0x49   : > { %936 = vst [vmem:[%s894_s27 + $0x30] sm:$0xff] (%p1274_p6), %v935_v1 }
  0x4e   : > { %1065 = vmatmul.msk.f32.vlgmr.msrb.gmra.mxu0 %vm373_vm4, %v1324_v18 }
  0xa2   : > { %v1403_v16 = vpop.permute.xlu0 %353 }
  0xb3   : > { %v397_v19 = vpop.f32.mrf.mxu0 }
  0xb4   : > { %v398_v22 = vadd.f32 %v397_v19, %v1403_v16 }
  0xb6   : > { %1048 = vmatmul.msk.f32.vlgmr.msra.gmra.mxu1 %vm400_vm5, %v398_v22 }
  0xb7   : > { %1061 = vmatpush.msk.msra.mxu1 %vm377_vm3, %v699_v23 }
  0xbb   : > { %v463_v30 = vpop.f32.mrf.mxu2  ;;  %v527_v31 = vpop.f32.mrf.mxu0 }
  0xbc   : > { %v464_v32 = vadd.f32 %v463_v30, %v1403_v16  ;;  %v528_v33 = vadd.f32 %v527_v31, %v1403_v16 }
  0xbe   : > { %1051 = vmatmul.msk.f32.vlgmr.msra.gmra.mxu3 %vm400_vm5, %v464_v32  ;;  %1054 = vmatmul.msk.f32.vlgmr.msrb.gmra.mxu2 %vm400_vm5, %v528_v33 }
  0xbf   : > { %1056 = vmatmul.msk.f32.vlgmr.msrb.gmra.mxu1 %vm373_vm4, %v1324_v18  ;;  %803 = vmatpush.msrb.mxu2 %v1372_v59 }
  0xc0   : > { %1067 = vmatpush.msk.msrb.mxu1 %vm377_vm3, %v827_v34  ;;  %739 = vmatpush.msra.mxu3 %v1372_v59 }
  0xc1   : > { %804 = vmatpush.msrb.mxu2 %v1377_v60 }
  0xc2   : > { %740 = vmatpush.msra.mxu3 %v1377_v60 }
  0xc3   : > { %v655_v35 = vpop.f32.mrf.mxu0 }
  0xc4   : > { %v656_v36 = vadd.f32 %v655_v35, %v1403_v16 }
  0xc6   : > { %1060 = vmatmul.msk.f32.vlgmr.msra.gmra.mxu2 %vm400_vm5, %v656_v36 }
  0xc7   : > { %1062 = vmatmul.msk.f32.vlgmr.msra.gmra.mxu1 %vm373_vm4, %v1324_v18 }
  0xcb   : > { %v783_v37 = vpop.f32.mrf.mxu0 }
  0xcc   : > { %v784_v38 = vadd.f32 %v783_v37, %v1403_v16 }
  0xce   : > { %1066 = vmatmul.msk.f32.vlgmr.msrb.gmra.mxu2 %vm400_vm5, %v784_v38 }
  0xcf   : > { %1068 = vmatmul.msk.f32.vlgmr.msrb.gmra.mxu1 %vm373_vm4, %v1324_v18 }
 0x133   : > { %v421_v41 = vpop.f32.mrf.mxu1 }
 0x134   : > { %v425_v18 = vrot.slane %v421_v41, 1  ;;  %428 = vst.msk [vmem:[%s1438_s14] sm:$0x1] %vm427_vm7, %v421_v41 }
 0x136   : > { %429 = vst.msk [vmem:[%s1438_s14 + $0x8] sm:$0x1] %vm427_vm7, %v425_v18 }
 0x13c   : > { %v591_v42 = vpop.f32.mrf.mxu1 }
 0x13d   : > { %v592_v43 = vadd.f32 %v591_v42, %v1403_v16 }
 0x13f   : > { %1057 = vmatmul.msk.f32.vlgmr.msrb.gmra.mxu3 %vm400_vm5, %v592_v43 }
 0x140   : > { %867 = vmatpush.msrb.mxu3 %v1372_v59 }
 0x141   : > { %v486_v44 = vpop.f32.mrf.mxu3  ;;  %v550_v45 = vpop.f32.mrf.mxu2 }
 0x142   : > { %v490_v46 = vrot.slane %v486_v44, 1  ;;  %492 = vst.msk [vmem:[%s1438_s14 + $0x1] sm:$0x1] %vm427_vm7, %v486_v44  ;;  %v554_v47 = vrot.slane %v550_v45, 1  ;;  %868 = vmatpush.msrb.mxu3 %v1377_v60 }
 0x143   : > { %556 = vst.msk [vmem:[%s1438_s14 + $0x2] sm:$0x1] %vm427_vm7, %v550_v45 }
 0x144   : > { %493 = vst.msk [vmem:[%s1438_s14 + $0x9] sm:$0x1] %vm427_vm7, %v490_v46  ;;  %v719_v48 = vpop.f32.mrf.mxu1 }
 0x145   : > { %557 = vst.msk [vmem:[%s1438_s14 + $0xa] sm:$0x1] %vm427_vm7, %v554_v47  ;;  %v720_v49 = vadd.f32 %v719_v48, %v1403_v16 }
 0x147   : > { %1063 = vmatmul.msk.f32.vlgmr.msra.gmra.mxu3 %vm400_vm5, %v720_v49 }
 0x149   : > { %v678_v50 = vpop.f32.mrf.mxu2 }
 0x14a   : > { %v682_v51 = vrot.slane %v678_v50, 1  ;;  %684 = vst.msk [vmem:[%s1438_s14 + $0x4] sm:$0x1] %vm427_vm7, %v678_v50 }
 0x14c   : > { %685 = vst.msk [vmem:[%s1438_s14 + $0xc] sm:$0x1] %vm427_vm7, %v682_v51  ;;  %v847_v52 = vpop.f32.mrf.mxu1 }
 0x14d   : > { %v848_v53 = vadd.f32 %v847_v52, %v1403_v16 }
 0x14f   : > { %1069 = vmatmul.msk.f32.vlgmr.msrb.gmra.mxu3 %vm400_vm5, %v848_v53 }
 0x151   : > { %v806_v54 = vpop.f32.mrf.mxu2 }
 0x152   : > { %v810_v55 = vrot.slane %v806_v54, 1  ;;  %812 = vst.msk [vmem:[%s1438_s14 + $0x6] sm:$0x1] %vm427_vm7, %v806_v54 }
 0x154   : > { %813 = vst.msk [vmem:[%s1438_s14 + $0xe] sm:$0x1] %vm427_vm7, %v810_v55 }
 0x1c2   : > { %v614_v56 = vpop.f32.mrf.mxu3 }
 0x1c3   : > { %v618_v57 = vrot.slane %v614_v56, 1  ;;  %620 = vst.msk [vmem:[%s1438_s14 + $0x3] sm:$0x1] %vm427_vm7, %v614_v56 }
 0x1c5   : > { %621 = vst.msk [vmem:[%s1438_s14 + $0xb] sm:$0x1] %vm427_vm7, %v618_v57 }
 0x1ca   : > { %v742_v58 = vpop.f32.mrf.mxu3 }
 0x1cb   : > { %v746_v59 = vrot.slane %v742_v58, 1  ;;  %748 = vst.msk [vmem:[%s1438_s14 + $0x5] sm:$0x1] %vm427_vm7, %v742_v58 }
 0x1cd   : > { %749 = vst.msk [vmem:[%s1438_s14 + $0xd] sm:$0x1] %vm427_vm7, %v746_v59 }
 0x1d1   : > { %890 = sbr.rel (!%p1274_p6) target bundleno = 478 (0x1de), region = 120 }
 0x1d2   : > { %v870_v60 = vpop.f32.mrf.mxu3 }
 0x1d3   : > { %v874_v61 = vrot.slane %v870_v60, 1  ;;  %876 = vst.msk [vmem:[%s1438_s14 + $0x7] sm:$0x1] %vm427_vm7, %v870_v60 }
 0x1d5   : > { %877 = vst.msk [vmem:[%s1438_s14 + $0xf] sm:$0x1] %vm427_vm7, %v874_v61 }
 0x1da   : > { %v929_v62 = vld [vmem:[%s1438_s14] sm:$0xff] }
 0x1db   : > { %930 = vst [vmem:[%s894_s27] sm:$0xff] %v929_v62 }
 0x1dc   : > { %v931_v63 = vld [vmem:[%s1438_s14 + $0x8] sm:$0xff] }
 0x1dd   : > { %932 = vst [vmem:[%s894_s27 + $0x10] sm:$0xff] %v931_v63 }
 0x1de PF: > { %s15_s24 = sadd.s32 1, %s1189_s24   ;;  %s1522_s18 = smov %s1169_s19 }
 0x1df   : > { %p12_p12 = scmp.ge.s32.totalorder %s15_s24, 6   ;;  %s1523_s19 = smov %s1282_s9 }
 0x1e0   : > { %s1524_s20 = smov %s1181_s22  ;;  %s1525_s21 = smov %s1185_s23 }
 0x1e1   : > { %s1526_s22 = smov %s1529_s25  ;;  %s1527_s23 = smov %s1533_s26 }
 0x1e2   :  { %14 = sbr.rel (!%p12_p12) target bundleno = 4 (0x4), region = 198 }

</bundles_post_ra>
